<compile_context>
chip_gen: v6e
topology: v6e:2x2x1
jax: 0.10.0
libtpu: 0.0.40
codegen_flags: <defaults>
</compile_context>

<pallas_src>
import jax
import jax.numpy as jnp
from jax.experimental import pallas as pl
from jax.experimental.pallas import tpu as pltpu

LANE = 128


def _round_up(x, m):
    return ((x + m - 1) // m) * m


def _pad2d(a, rows, cols):
    return jnp.pad(a, ((0, rows - a.shape[0]), (0, cols - a.shape[1])))


# ------------------------------------------------------------------- kernel --

def _conv(A, x_src, W, b, x_dst, W_root, f_in, f_out):
    """One dense-adjacency conv: A @ x_src @ W (+ x_dst @ W_root) + b.

    A, W, W_root are bf16; x_* and b are f32.  MXU accumulation is f32.
    f_in / f_out are the *logical* (unpadded) dims, used only to pick the matmul
    association statically (min(F_in, F_out) rides through the big A-matmul).
    """
    xs = x_src.astype(jnp.bfloat16)
    if f_out < f_in:
        # A @ (X W): narrow feature width on the (large) aggregation matmul.
        xw = jnp.dot(xs, W, preferred_element_type=jnp.float32)
        out = jnp.dot(A, xw.astype(jnp.bfloat16), preferred_element_type=jnp.float32)
        if x_dst is not None:
            out = out + jnp.dot(x_dst.astype(jnp.bfloat16), W_root,
                                preferred_element_type=jnp.float32)
    else:
        # (A X) @ W; fold the root-linear into the same dot by packing along K.
        agg = jnp.dot(A, xs, preferred_element_type=jnp.float32)
        if x_dst is not None:
            lhs = jnp.concatenate([agg, x_dst], axis=1).astype(jnp.bfloat16)
            rhs = jnp.concatenate([W, W_root], axis=0)
            out = jnp.dot(lhs, rhs, preferred_element_type=jnp.float32)
        else:
            out = jnp.dot(agg.astype(jnp.bfloat16), W, preferred_element_type=jnp.float32)
    return out + b


def _make_forward_kernel(num_layers, layer_dims):
    """Fused forward: every layer, every edge type, mean-aggregation and ReLU, all in VMEM."""

    def kernel(*refs):
        xp_ref, xl_ref, agcn_ref, alp_ref, apl_ref = refs[:5]
        param_refs = refs[5:5 + 8 * num_layers]
        op_ref, ol_ref = refs[5 + 8 * num_layers:]

        A_gcn = agcn_ref[...]   # (Np, Np) bf16, sym-normalized adjacency with self loops
        A_lp = alp_ref[...]     # (Nl, Np) bf16, label <- paper  (sum aggregation)
        A_pl = apl_ref[...]     # (Np, Nl) bf16, paper <- label  (sum aggregation)
        xp = xp_ref[...]        # (Np, 128k) f32, lane-padded features
        xl = xl_ref[...]        # (Nl, 128k) f32

        for li in range(num_layers):
            prefs = param_refs[8 * li: 8 * (li + 1)]
            (gcn_w, gcn_b, pl_rel_w, pl_rel_b, pl_root_w,
             lp_rel_w, lp_rel_b, lp_root_w) = [r[...] for r in prefs]
            f_in, f_out = layer_dims[li]

            # GCNConv ('paper','cites','paper'): no root term -> no zero-weight matmul.
            out_pp = _conv(A_gcn, xp, gcn_w, gcn_b, None, None, f_in, f_out)
            # GraphConv ('label','rev_is','paper'): destination = paper.
            out_l2p = _conv(A_pl, xl, pl_rel_w, pl_rel_b, xp, pl_root_w, f_in, f_out)
            # GraphConv ('paper','is','label'): destination = label.
            out_p2l = _conv(A_lp, xp, lp_rel_w, lp_rel_b, xl, lp_root_w, f_in, f_out)

            new_p = 0.5 * (out_pp + out_l2p)   # HeteroConv aggr='mean' (2 convs hit 'paper')
            new_l = out_p2l                    # single conv hits 'label'
            if li < num_layers - 1:            # ReLU after every layer except the last
                new_p = jnp.maximum(new_p, 0.0)
                new_l = jnp.maximum(new_l, 0.0)
            xp, xl = new_p, new_l

        op_ref[...] = xp                       # lane-dense (N, 128k) f32 stores
        ol_ref[...] = xl

    return kernel


# ------------------------------------------------------------------ wrapper --

def hetero_gcn_forward(params, x_paper, x_label, A_gcn, A_lp, A_pl, two_layers):
    layer_names = ("layer1", "layer2") if two_layers else ("layer1", "layer2", "layer3")
    num_layers = len(layer_names)
    Np, f_in0 = x_paper.shape
    Nl = x_label.shape[0]
    embed_dim = params[layer_names[-1]]["gcn_w"].shape[1]

    # logical per-layer (F_in, F_out) used for the static association choice
    layer_dims = []
    d = f_in0
    for name in layer_names:
        d_out = params[name]["gcn_w"].shape[1]
        layer_dims.append((d, d_out))
        d = d_out

    pad_in0 = _round_up(f_in0, LANE)
    pad_out_last = _round_up(embed_dim, LANE)

    # Lane-pad node features (f32); adjacencies to bf16 (MXU-native, halves HBM bytes).
    xp = _pad2d(x_paper.astype(jnp.float32), Np, pad_in0)
    xl = _pad2d(x_label.astype(jnp.float32), Nl, pad_in0)
    a_gcn = A_gcn.astype(jnp.bfloat16)
    a_lp = A_lp.astype(jnp.bfloat16)
    a_pl = A_pl.astype(jnp.bfloat16)

    flat_params = []
    for name, (din, dout) in zip(layer_names, layer_dims):
        p = params[name]
        pr, pc = _round_up(din, LANE), _round_up(dout, LANE)
        def w(key):   # sublane/lane-padded bf16 weight
            return _pad2d(p[key], pr, pc).astype(jnp.bfloat16)
        def b(key):   # lane-padded f32 bias, shape (1, pc)
            return _pad2d(p[key].reshape(1, -1), 1, pc)
        flat_params += [w("gcn_w"), b("gcn_b"),
                        w("pl_rel_w"), b("pl_rel_b"), w("pl_root_w"),
                        w("lp_rel_w"), b("lp_rel_b"), w("lp_root_w")]

    vmem = pl.BlockSpec(memory_space=pltpu.MemorySpace.VMEM)
    n_inputs = 5 + 8 * num_layers
    out_p_pad, out_l_pad = pl.pallas_call(
        _make_forward_kernel(num_layers, tuple(layer_dims)),
        out_shape=(jax.ShapeDtypeStruct((Np, pad_out_last), jnp.float32),
                   jax.ShapeDtypeStruct((Nl, pad_out_last), jnp.float32)),
        in_specs=[vmem] * n_inputs,
        out_specs=(vmem, vmem),
    )(xp, xl, a_gcn, a_lp, a_pl, *flat_params)

    return out_p_pad[:, :embed_dim], out_l_pad[:, :embed_dim]


# ------------------------------------------------------------- model params --

def init_layer_params(key, in_dim, out_dim):
    ks = jax.random.split(key, 8)
    s = float(in_dim) ** -0.5
    return dict(
        # GCNConv ('paper','cites','paper')
        gcn_w=jax.random.normal(ks[0], (in_dim, out_dim), jnp.float32) * s,
        gcn_b=jax.random.normal(ks[1], (out_dim,), jnp.float32) * 0.01,
        # GraphConv ('label','rev_is','paper')  (dst = paper)
        pl_rel_w=jax.random.normal(ks[2], (in_dim, out_dim), jnp.float32) * s,
        pl_rel_b=jax.random.normal(ks[3], (out_dim,), jnp.float32) * 0.01,
        pl_root_w=jax.random.normal(ks[4], (in_dim, out_dim), jnp.float32) * s,
        # GraphConv ('paper','is','label')      (dst = label)
        lp_rel_w=jax.random.normal(ks[5], (in_dim, out_dim), jnp.float32) * s,
        lp_rel_b=jax.random.normal(ks[6], (out_dim,), jnp.float32) * 0.01,
        lp_root_w=jax.random.normal(ks[7], (in_dim, out_dim), jnp.float32) * s,
    )


def init_params(key, f_in, hidden, embed_dim, two_layers):
    k1, k2, k3 = jax.random.split(key, 3)
    params = {"layer1": init_layer_params(k1, f_in, hidden)}
    if two_layers:
        params["layer2"] = init_layer_params(k2, hidden, embed_dim)
    else:
        params["layer2"] = init_layer_params(k2, hidden, 48)
        params["layer3"] = init_layer_params(k3, 48, embed_dim)
    return params


# ---------------------------------------------------------- pure-JAX reference

def reference_forward(params, xp, xl, A_gcn, A_lp, A_pl, two_layers):
    names = ("layer1", "layer2") if two_layers else ("layer1", "layer2", "layer3")
    for i, name in enumerate(names):
        p = params[name]
        out_pp = A_gcn @ xp @ p["gcn_w"] + p["gcn_b"]
        out_l2p = A_pl @ xl @ p["pl_rel_w"] + p["pl_rel_b"] + xp @ p["pl_root_w"]
        out_p2l = A_lp @ xp @ p["lp_rel_w"] + p["lp_rel_b"] + xl @ p["lp_root_w"]
        new_p = 0.5 * (out_pp + out_l2p)
        new_l = out_p2l
        if i < len(names) - 1:
            new_p = jnp.maximum(new_p, 0.0)
            new_l = jnp.maximum(new_l, 0.0)
        xp, xl = new_p, new_l
    return xp, xl


# --------------------------------------------------------------------- main --

if __name__ == "__main__":
    key = jax.random.PRNGKey(0)
    keys = jax.random.split(key, 8)

    # small shapes consistent with the module
    Np, Nl = 32, 8            # paper / label node counts
    F_in = 16                 # input feature dim (layer1 lazy in_dim = -1 -> F_in)
    hidden, embed_dim = 32, 8
    two_layers = True
    E_pp, E_is = 64, 24       # edge counts

    x_paper = jax.random.normal(keys[0], (Np, F_in), jnp.float32)
    x_label = jax.random.normal(keys[1], (Nl, F_in), jnp.float32)

    # ('paper','cites','paper') edges (no self loops; GCN adds them)
    src_pp = jax.random.randint(keys[2], (E_pp,), 0, Np)
    dst_pp = jax.random.randint(keys[3], (E_pp,), 0, Np)
    dst_pp = jnp.where(dst_pp == src_pp, (dst_pp + 1) % Np, dst_pp)

    # ('paper','is','label') edges; rev_is is the transpose
    src_is = jax.random.randint(keys[4], (E_is,), 0, Np)   # paper
    dst_is = jax.random.randint(keys[5], (E_is,), 0, Nl)   # label

    # Dense normalized GCN adjacency: A_hat[i,j] = (A+I)[i,j] / sqrt(deg_i * deg_j)
    A = jnp.zeros((Np, Np), jnp.float32).at[dst_pp, src_pp].add(1.0)
    A = A + jnp.eye(Np, dtype=jnp.float32)
    deg = A.sum(axis=1)
    dinv = jnp.where(deg > 0, 1.0 / jnp.sqrt(deg), 0.0)
    A_gcn = A * dinv[:, None] * dinv[None, :]

    # Dense (unnormalized, sum-aggregation) adjacencies for GraphConv
    A_lp = jnp.zeros((Nl, Np), jnp.float32).at[dst_is, src_is].add(1.0)  # label <- paper
    A_pl = jnp.zeros((Np, Nl), jnp.float32).at[src_is, dst_is].add(1.0)  # paper <- label

    params = init_params(keys[6], F_in, hidden, embed_dim, two_layers)

    fwd = jax.jit(hetero_gcn_forward, static_argnames=("two_layers",))
    out_paper, out_label = fwd(params, x_paper, x_label, A_gcn, A_lp, A_pl,
                               two_layers=two_layers)
    jax.block_until_ready((out_paper, out_label))

    assert out_paper.shape == (Np, embed_dim)
    assert out_label.shape == (Nl, embed_dim)

    # sanity check against a pure-JAX f32 reference (loose tolerance: bf16 MXU inputs)
    ref_p, ref_l = reference_forward(params, x_paper, x_label, A_gcn, A_lp, A_pl, two_layers)
    scale = float(jnp.maximum(jnp.max(jnp.abs(ref_p)), jnp.max(jnp.abs(ref_l))))
    err = float(jnp.maximum(jnp.max(jnp.abs(out_paper - ref_p)),
                            jnp.max(jnp.abs(out_label - ref_l))))
    assert err <= 0.05 + 0.05 * scale, f"mismatch: err={err}, scale={scale}"

    print("KERNEL_OK")
</pallas_src>

<mosaic_0001>
module attributes {stable_mosaic.version = 11 : i64} {
  func.func @kernel(%arg0: memref<32x128xf32, #tpu.memory_space<vmem>>, %arg1: memref<8x128xf32, #tpu.memory_space<vmem>>, %arg2: memref<32x32xbf16, #tpu.memory_space<vmem>>, %arg3: memref<8x32xbf16, #tpu.memory_space<vmem>>, %arg4: memref<32x8xbf16, #tpu.memory_space<vmem>>, %arg5: memref<128x128xbf16, #tpu.memory_space<vmem>>, %arg6: memref<1x128xf32, #tpu.memory_space<vmem>>, %arg7: memref<128x128xbf16, #tpu.memory_space<vmem>>, %arg8: memref<1x128xf32, #tpu.memory_space<vmem>>, %arg9: memref<128x128xbf16, #tpu.memory_space<vmem>>, %arg10: memref<128x128xbf16, #tpu.memory_space<vmem>>, %arg11: memref<1x128xf32, #tpu.memory_space<vmem>>, %arg12: memref<128x128xbf16, #tpu.memory_space<vmem>>, %arg13: memref<128x128xbf16, #tpu.memory_space<vmem>>, %arg14: memref<1x128xf32, #tpu.memory_space<vmem>>, %arg15: memref<128x128xbf16, #tpu.memory_space<vmem>>, %arg16: memref<1x128xf32, #tpu.memory_space<vmem>>, %arg17: memref<128x128xbf16, #tpu.memory_space<vmem>>, %arg18: memref<128x128xbf16, #tpu.memory_space<vmem>>, %arg19: memref<1x128xf32, #tpu.memory_space<vmem>>, %arg20: memref<128x128xbf16, #tpu.memory_space<vmem>>, %arg21: memref<32x128xf32, #tpu.memory_space<vmem>>, %arg22: memref<8x128xf32, #tpu.memory_space<vmem>>) attributes {dimension_semantics = [], scalar_prefetch = 0 : i64, scratch_operands = 0 : i64, tpu.core_type = #tpu.core_type<tc>} {
    %c0 = arith.constant 0 : index
    %c0_0 = arith.constant 0 : index
    %0 = vector.load %arg2[%c0, %c0_0] : memref<32x32xbf16, #tpu.memory_space<vmem>>, vector<32x32xbf16>
    %c0_1 = arith.constant 0 : index
    %c0_2 = arith.constant 0 : index
    %1 = vector.load %arg3[%c0_1, %c0_2] : memref<8x32xbf16, #tpu.memory_space<vmem>>, vector<8x32xbf16>
    %c0_3 = arith.constant 0 : index
    %c0_4 = arith.constant 0 : index
    %2 = vector.load %arg4[%c0_3, %c0_4] : memref<32x8xbf16, #tpu.memory_space<vmem>>, vector<32x8xbf16>
    %c0_5 = arith.constant 0 : index
    %c0_6 = arith.constant 0 : index
    %3 = vector.load %arg0[%c0_5, %c0_6] : memref<32x128xf32, #tpu.memory_space<vmem>>, vector<32x128xf32>
    %c0_7 = arith.constant 0 : index
    %c0_8 = arith.constant 0 : index
    %4 = vector.load %arg1[%c0_7, %c0_8] : memref<8x128xf32, #tpu.memory_space<vmem>>, vector<8x128xf32>
    %c0_9 = arith.constant 0 : index
    %c0_10 = arith.constant 0 : index
    %5 = vector.load %arg5[%c0_9, %c0_10] : memref<128x128xbf16, #tpu.memory_space<vmem>>, vector<128x128xbf16>
    %c0_11 = arith.constant 0 : index
    %c0_12 = arith.constant 0 : index
    %6 = vector.load %arg6[%c0_11, %c0_12] : memref<1x128xf32, #tpu.memory_space<vmem>>, vector<1x128xf32>
    %c0_13 = arith.constant 0 : index
    %c0_14 = arith.constant 0 : index
    %7 = vector.load %arg7[%c0_13, %c0_14] : memref<128x128xbf16, #tpu.memory_space<vmem>>, vector<128x128xbf16>
    %c0_15 = arith.constant 0 : index
    %c0_16 = arith.constant 0 : index
    %8 = vector.load %arg8[%c0_15, %c0_16] : memref<1x128xf32, #tpu.memory_space<vmem>>, vector<1x128xf32>
    %c0_17 = arith.constant 0 : index
    %c0_18 = arith.constant 0 : index
    %9 = vector.load %arg9[%c0_17, %c0_18] : memref<128x128xbf16, #tpu.memory_space<vmem>>, vector<128x128xbf16>
    %c0_19 = arith.constant 0 : index
    %c0_20 = arith.constant 0 : index
    %10 = vector.load %arg10[%c0_19, %c0_20] : memref<128x128xbf16, #tpu.memory_space<vmem>>, vector<128x128xbf16>
    %c0_21 = arith.constant 0 : index
    %c0_22 = arith.constant 0 : index
    %11 = vector.load %arg11[%c0_21, %c0_22] : memref<1x128xf32, #tpu.memory_space<vmem>>, vector<1x128xf32>
    %c0_23 = arith.constant 0 : index
    %c0_24 = arith.constant 0 : index
    %12 = vector.load %arg12[%c0_23, %c0_24] : memref<128x128xbf16, #tpu.memory_space<vmem>>, vector<128x128xbf16>
    %13 = arith.truncf %3 : vector<32x128xf32> to vector<32x128xbf16>
    %cst = arith.constant dense<0.000000e+00> : vector<32x128xf32>
    %14 = tpu.matmul %0, %13, %cst {dimension_numbers = #tpu.dot_dimension_numbers<[1], [0], [0], [1], [0, 0, 1, 1], [], []>} : vector<32x32xbf16>, vector<32x128xbf16>, vector<32x128xf32> -> vector<32x128xf32>
    %15 = arith.truncf %14 : vector<32x128xf32> to vector<32x128xbf16>
    %cst_25 = arith.constant dense<0.000000e+00> : vector<32x128xf32>
    %16 = tpu.matmul %15, %5, %cst_25 {dimension_numbers = #tpu.dot_dimension_numbers<[1], [0], [0], [1], [0, 0, 1, 1], [], []>} : vector<32x128xbf16>, vector<128x128xbf16>, vector<32x128xf32> -> vector<32x128xf32>
    %17 = vector.broadcast %6 : vector<1x128xf32> to vector<32x128xf32>
    %18 = arith.addf %16, %17 : vector<32x128xf32>
    %19 = arith.truncf %4 : vector<8x128xf32> to vector<8x128xbf16>
    %cst_26 = arith.constant dense<0.000000e+00> : vector<32x128xf32>
    %20 = tpu.matmul %2, %19, %cst_26 {dimension_numbers = #tpu.dot_dimension_numbers<[1], [0], [0], [1], [0, 0, 1, 1], [], []>} : vector<32x8xbf16>, vector<8x128xbf16>, vector<32x128xf32> -> vector<32x128xf32>
    %21 = tpu.concatenate %20, %3 in 1 : vector<32x128xf32>, vector<32x128xf32> -> vector<32x256xf32>
    %22 = arith.truncf %21 : vector<32x256xf32> to vector<32x256xbf16>
    %23 = tpu.concatenate %7, %9 in 0 : vector<128x128xbf16>, vector<128x128xbf16> -> vector<256x128xbf16>
    %cst_27 = arith.constant dense<0.000000e+00> : vector<32x128xf32>
    %24 = tpu.matmul %22, %23, %cst_27 {dimension_numbers = #tpu.dot_dimension_numbers<[1], [0], [0], [1], [0, 0, 1, 1], [], []>} : vector<32x256xbf16>, vector<256x128xbf16>, vector<32x128xf32> -> vector<32x128xf32>
    %25 = vector.broadcast %8 : vector<1x128xf32> to vector<32x128xf32>
    %26 = arith.addf %24, %25 : vector<32x128xf32>
    %27 = arith.truncf %3 : vector<32x128xf32> to vector<32x128xbf16>
    %cst_28 = arith.constant dense<0.000000e+00> : vector<8x128xf32>
    %28 = tpu.matmul %1, %27, %cst_28 {dimension_numbers = #tpu.dot_dimension_numbers<[1], [0], [0], [1], [0, 0, 1, 1], [], []>} : vector<8x32xbf16>, vector<32x128xbf16>, vector<8x128xf32> -> vector<8x128xf32>
    %29 = tpu.concatenate %28, %4 in 1 : vector<8x128xf32>, vector<8x128xf32> -> vector<8x256xf32>
    %30 = arith.truncf %29 : vector<8x256xf32> to vector<8x256xbf16>
    %31 = tpu.concatenate %10, %12 in 0 : vector<128x128xbf16>, vector<128x128xbf16> -> vector<256x128xbf16>
    %cst_29 = arith.constant dense<0.000000e+00> : vector<8x128xf32>
    %32 = tpu.matmul %30, %31, %cst_29 {dimension_numbers = #tpu.dot_dimension_numbers<[1], [0], [0], [1], [0, 0, 1, 1], [], []>} : vector<8x256xbf16>, vector<256x128xbf16>, vector<8x128xf32> -> vector<8x128xf32>
    %33 = vector.broadcast %11 : vector<1x128xf32> to vector<8x128xf32>
    %34 = arith.addf %32, %33 : vector<8x128xf32>
    %35 = arith.addf %18, %26 : vector<32x128xf32>
    %cst_30 = arith.constant 5.000000e-01 : f32
    %36 = vector.broadcast %cst_30 : f32 to vector<32x128xf32>
    %37 = arith.mulf %36, %35 : vector<32x128xf32>
    %cst_31 = arith.constant 0.000000e+00 : f32
    %38 = vector.broadcast %cst_31 : f32 to vector<32x128xf32>
    %39 = arith.maximumf %37, %38 : vector<32x128xf32>
    %cst_32 = arith.constant 0.000000e+00 : f32
    %40 = vector.broadcast %cst_32 : f32 to vector<8x128xf32>
    %41 = arith.maximumf %34, %40 : vector<8x128xf32>
    %c0_33 = arith.constant 0 : index
    %c0_34 = arith.constant 0 : index
    %42 = vector.load %arg13[%c0_33, %c0_34] : memref<128x128xbf16, #tpu.memory_space<vmem>>, vector<128x128xbf16>
    %c0_35 = arith.constant 0 : index
    %c0_36 = arith.constant 0 : index
    %43 = vector.load %arg14[%c0_35, %c0_36] : memref<1x128xf32, #tpu.memory_space<vmem>>, vector<1x128xf32>
    %c0_37 = arith.constant 0 : index
    %c0_38 = arith.constant 0 : index
    %44 = vector.load %arg15[%c0_37, %c0_38] : memref<128x128xbf16, #tpu.memory_space<vmem>>, vector<128x128xbf16>
    %c0_39 = arith.constant 0 : index
    %c0_40 = arith.constant 0 : index
    %45 = vector.load %arg16[%c0_39, %c0_40] : memref<1x128xf32, #tpu.memory_space<vmem>>, vector<1x128xf32>
    %c0_41 = arith.constant 0 : index
    %c0_42 = arith.constant 0 : index
    %46 = vector.load %arg17[%c0_41, %c0_42] : memref<128x128xbf16, #tpu.memory_space<vmem>>, vector<128x128xbf16>
    %c0_43 = arith.constant 0 : index
    %c0_44 = arith.constant 0 : index
    %47 = vector.load %arg18[%c0_43, %c0_44] : memref<128x128xbf16, #tpu.memory_space<vmem>>, vector<128x128xbf16>
    %c0_45 = arith.constant 0 : index
    %c0_46 = arith.constant 0 : index
    %48 = vector.load %arg19[%c0_45, %c0_46] : memref<1x128xf32, #tpu.memory_space<vmem>>, vector<1x128xf32>
    %c0_47 = arith.constant 0 : index
    %c0_48 = arith.constant 0 : index
    %49 = vector.load %arg20[%c0_47, %c0_48] : memref<128x128xbf16, #tpu.memory_space<vmem>>, vector<128x128xbf16>
    %50 = arith.truncf %39 : vector<32x128xf32> to vector<32x128xbf16>
    %cst_49 = arith.constant dense<0.000000e+00> : vector<32x128xf32>
    %51 = tpu.matmul %50, %42, %cst_49 {dimension_numbers = #tpu.dot_dimension_numbers<[1], [0], [0], [1], [0, 0, 1, 1], [], []>} : vector<32x128xbf16>, vector<128x128xbf16>, vector<32x128xf32> -> vector<32x128xf32>
    %52 = arith.truncf %51 : vector<32x128xf32> to vector<32x128xbf16>
    %cst_50 = arith.constant dense<0.000000e+00> : vector<32x128xf32>
    %53 = tpu.matmul %0, %52, %cst_50 {dimension_numbers = #tpu.dot_dimension_numbers<[1], [0], [0], [1], [0, 0, 1, 1], [], []>} : vector<32x32xbf16>, vector<32x128xbf16>, vector<32x128xf32> -> vector<32x128xf32>
    %54 = vector.broadcast %43 : vector<1x128xf32> to vector<32x128xf32>
    %55 = arith.addf %53, %54 : vector<32x128xf32>
    %56 = arith.truncf %41 : vector<8x128xf32> to vector<8x128xbf16>
    %cst_51 = arith.constant dense<0.000000e+00> : vector<8x128xf32>
    %57 = tpu.matmul %56, %44, %cst_51 {dimension_numbers = #tpu.dot_dimension_numbers<[1], [0], [0], [1], [0, 0, 1, 1], [], []>} : vector<8x128xbf16>, vector<128x128xbf16>, vector<8x128xf32> -> vector<8x128xf32>
    %58 = arith.truncf %57 : vector<8x128xf32> to vector<8x128xbf16>
    %cst_52 = arith.constant dense<0.000000e+00> : vector<32x128xf32>
    %59 = tpu.matmul %2, %58, %cst_52 {dimension_numbers = #tpu.dot_dimension_numbers<[1], [0], [0], [1], [0, 0, 1, 1], [], []>} : vector<32x8xbf16>, vector<8x128xbf16>, vector<32x128xf32> -> vector<32x128xf32>
    %60 = arith.truncf %39 : vector<32x128xf32> to vector<32x128xbf16>
    %cst_53 = arith.constant dense<0.000000e+00> : vector<32x128xf32>
    %61 = tpu.matmul %60, %46, %cst_53 {dimension_numbers = #tpu.dot_dimension_numbers<[1], [0], [0], [1], [0, 0, 1, 1], [], []>} : vector<32x128xbf16>, vector<128x128xbf16>, vector<32x128xf32> -> vector<32x128xf32>
    %62 = arith.addf %59, %61 : vector<32x128xf32>
    %63 = vector.broadcast %45 : vector<1x128xf32> to vector<32x128xf32>
    %64 = arith.addf %62, %63 : vector<32x128xf32>
    %65 = arith.truncf %39 : vector<32x128xf32> to vector<32x128xbf16>
    %cst_54 = arith.constant dense<0.000000e+00> : vector<32x128xf32>
    %66 = tpu.matmul %65, %47, %cst_54 {dimension_numbers = #tpu.dot_dimension_numbers<[1], [0], [0], [1], [0, 0, 1, 1], [], []>} : vector<32x128xbf16>, vector<128x128xbf16>, vector<32x128xf32> -> vector<32x128xf32>
    %67 = arith.truncf %66 : vector<32x128xf32> to vector<32x128xbf16>
    %cst_55 = arith.constant dense<0.000000e+00> : vector<8x128xf32>
    %68 = tpu.matmul %1, %67, %cst_55 {dimension_numbers = #tpu.dot_dimension_numbers<[1], [0], [0], [1], [0, 0, 1, 1], [], []>} : vector<8x32xbf16>, vector<32x128xbf16>, vector<8x128xf32> -> vector<8x128xf32>
    %69 = arith.truncf %41 : vector<8x128xf32> to vector<8x128xbf16>
    %cst_56 = arith.constant dense<0.000000e+00> : vector<8x128xf32>
    %70 = tpu.matmul %69, %49, %cst_56 {dimension_numbers = #tpu.dot_dimension_numbers<[1], [0], [0], [1], [0, 0, 1, 1], [], []>} : vector<8x128xbf16>, vector<128x128xbf16>, vector<8x128xf32> -> vector<8x128xf32>
    %71 = arith.addf %68, %70 : vector<8x128xf32>
    %72 = vector.broadcast %48 : vector<1x128xf32> to vector<8x128xf32>
    %73 = arith.addf %71, %72 : vector<8x128xf32>
    %74 = arith.addf %55, %64 : vector<32x128xf32>
    %cst_57 = arith.constant 5.000000e-01 : f32
    %75 = vector.broadcast %cst_57 : f32 to vector<32x128xf32>
    %76 = arith.mulf %75, %74 : vector<32x128xf32>
    %c0_58 = arith.constant 0 : index
    %c0_59 = arith.constant 0 : index
    %77 = vector.load %arg21[%c0_58, %c0_59] : memref<32x128xf32, #tpu.memory_space<vmem>>, vector<32x128xf32>
    tpu.vector_store %arg21[%c0_58, %c0_59], %76 {strides = array<i32>} : memref<32x128xf32, #tpu.memory_space<vmem>>, vector<32x128xf32>,
    %c0_60 = arith.constant 0 : index
    %c0_61 = arith.constant 0 : index
    %78 = vector.load %arg22[%c0_60, %c0_61] : memref<8x128xf32, #tpu.memory_space<vmem>>, vector<8x128xf32>
    tpu.vector_store %arg22[%c0_60, %c0_61], %73 {strides = array<i32>} : memref<8x128xf32, #tpu.memory_space<vmem>>, vector<8x128xf32>,
    return
  }
}

</mosaic_0001>

<bundles_post_ra>
// kernel: hetero_gcn_forward.1
= control target key start
LH: loop header
LB: loop body
LE: loop exit
PB: predicated region body
PF: predicated region fallthrough
CT: control target
= control target key end

     0   :  { %s2535_s0 = inlined_call_operand.vmem [shape: f32[32,128], index: 0, kind: input, shape index: {}]   ;;  %s2536_s1 = inlined_call_operand.vmem [shape: f32[8,128], index: 1, kind: input, shape index: {}]   ;;  %s2537_s2 = inlined_call_operand.vmem [shape: bf16[32,32], index: 2, kind: input, shape index: {}]   ;;  %s2538_s3 = inlined_call_operand.vmem [shape: bf16[8,32], index: 3, kind: input, shape index: {}]   ;;  %s2539_s4 = inlined_call_operand.vmem [shape: bf16[32,8], index: 4, kind: input, shape index: {}]   ;;  %s2540_s5 = inlined_call_operand.vmem [shape: bf16[128,128], index: 5, kind: input, shape index: {}]   ;;  %s2541_s6 = inlined_call_operand.vmem [shape: f32[1,128], index: 6, kind: input, shape index: {}]   ;;  %s2542_s7 = inlined_call_operand.vmem [shape: bf16[128,128], index: 7, kind: input, shape index: {}]   ;;  %s2543_s8 = inlined_call_operand.vmem [shape: f32[1,128], index: 8, kind: input, shape index: {}]   ;;  %s2544_s9 = inlined_call_operand.vmem [shape: bf16[128,128], index: 9, kind: input, shape index: {}]   ;;  %s2545_s10 = inlined_call_operand.vmem [shape: bf16[128,128], index: 10, kind: input, shape index: {}]   ;;  %s2546_s11 = inlined_call_operand.vmem [shape: f32[1,128], index: 11, kind: input, shape index: {}]   ;;  %s2547_s12 = inlined_call_operand.vmem [shape: bf16[128,128], index: 12, kind: input, shape index: {}]   ;;  %s2548_s13 = inlined_call_operand.vmem [shape: bf16[128,128], index: 13, kind: input, shape index: {}]   ;;  %s2549_s14 = inlined_call_operand.vmem [shape: f32[1,128], index: 14, kind: input, shape index: {}]   ;;  %s2550_s15 = inlined_call_operand.vmem [shape: bf16[128,128], index: 15, kind: input, shape index: {}]   ;;  %s2551_s16 = inlined_call_operand.vmem [shape: f32[1,128], index: 16, kind: input, shape index: {}]   ;;  %s2552_s17 = inlined_call_operand.vmem [shape: bf16[128,128], index: 17, kind: input, shape index: {}]   ;;  %s2553_s18 = inlined_call_operand.vmem [shape: bf16[128,128], index: 18, kind: input, shape index: {}]   ;;  %s2554_s19 = inlined_call_operand.vmem [shape: f32[1,128], index: 19, kind: input, shape index: {}]   ;;  %s2555_s20 = inlined_call_operand.vmem [shape: bf16[128,128], index: 20, kind: input, shape index: {}]   ;;  %s2556_s21 = inlined_call_operand.vmem [shape: f32[32,128], index: 21, kind: output, shape index: {0}]   ;;  %s2557_s22 = inlined_call_operand.hbm [shape: f32[8,128], index: 22, kind: output, shape index: {1}]  }
   0x1   :  { %2562 = sst [smem:[#allocation5_spill]] %s2535_s0 }
   0x2   :  { %2563 = sst [smem:[#allocation6_spill]] %s2536_s1 }
   0x3   :  { %2564 = sst [smem:[#allocation7_spill]] %s2537_s2 }
   0x4   :  { %2565 = sst [smem:[#allocation8_spill]] %s2538_s3 }
   0x5   :  { %2566 = sst [smem:[#allocation9_spill]] %s2539_s4 }
   0x6   :  { %2567 = sst [smem:[#allocation10_spill]] %s2540_s5 }
   0x7   :  { %2568 = sst [smem:[#allocation11_spill]] %s2541_s6 }
   0x8   :  { %s2569_s29 = sld [smem:[#allocation5_spill]]  ;;  %vm181_vm0 = vcmask 261120   ;;  %vm360_vm1 = vcmask 1043456   ;;  %vm353_vm2 = vcmask 64512   ;;  %v1921_v14 = vld [vmem:[%s2544_s9 + $0x38] sm:$0xff]   ;;  %v1924_v19 = vld [vmem:[%s2544_s9 + $0x30] sm:$0xff]  }
   0x9   :  { %s2570_s25 = sld [smem:[#allocation7_spill]]  ;;  %v1923_v18 = vld [vmem:[%s2542_s7 + $0x38] sm:$0xff]   ;;  %v1926_v20 = vld [vmem:[%s2542_s7 + $0x30] sm:$0xff]   ;;  %v1927_v22 = vld [vmem:[%s2544_s9 + $0x28] sm:$0xff]  }
   0xa   :  { %s2571_s27 = sld [smem:[#allocation6_spill]]  ;;  %v1929_v24 = vld [vmem:[%s2542_s7 + $0x28] sm:$0xff]   ;;  %v1930_v25 = vld [vmem:[%s2544_s9 + $0x20] sm:$0xff]  }
   0xb   :  { %s2572_s4 = sld [smem:[#allocation10_spill]]  ;;  %v1932_v26 = vld [vmem:[%s2542_s7 + $0x20] sm:$0xff]  }
   0xc   :  { %s2573_s24 = sld [smem:[#allocation9_spill]] }
   0xe   :  { %v83_v0 = vld [vmem:[%s2569_s29 + $0x10] sm:$0xff]  ;;  %v84_v1 = vld [vmem:[%s2569_s29 + $0x18] sm:$0xff]  ;;  %v81_v2 = vld [vmem:[%s2569_s29] sm:$0xff] }
   0xf   :  { %v2148_v3 = vpack.c.bf16 %v84_v1, %v83_v0  ;;  %v82_v4 = vld [vmem:[%s2569_s29 + $0x8] sm:$0xff]  ;;  %v2158_v6 = vld [vmem:[%s2570_s25] sm:$0xff]  }
  0x10   :  { %v2153_v5 = vpack.c.bf16 %v82_v4, %v81_v2  ;;  %v85_v7 = vld [vmem:[%s2571_s27] sm:$0xff]  ;;  %1750 = vmatprep.mubr.msk.bf16.mxu0 %vm181_vm0, %v2158_v6  ;;  %v2171_v8 = vld [vmem:[%s2570_s25 + $0x8] sm:$0xff]  }
  0x11   :  { %1746 = vmatprep.subr.bf16.mxu0 %v2148_v3  ;;  %v2173_v9 = vpack.c.bf16 %v85_v7, %v85_v7  ;;  %v1919_v10 = vld [vmem:[%s2572_s4 + $0x38] sm:$0xff]   ;;  %v1920_v11 = vld [vmem:[%s2572_s4 + $0x30] sm:$0xff]   ;;  %v1922_v15 = vld [vmem:[%s2572_s4 + $0x28] sm:$0xff]  }
  0x12   :  { %1747 = vmatpush3.bf16.msra.mxu0 %v2148_v3  ;;  %v2185_v12 = vld [vmem:[%s2573_s24] sm:$0xff]   ;;  %1754 = vmatprep.subr.bf16.mxu1 %v1919_v10  ;;  %v2207_v17 = vld [vmem:[%s2573_s24 + $0x8] sm:$0xff]   ;;  %v1928_v21 = vld [vmem:[%s2572_s4 + $0x18] sm:$0xff]  }
  0x13   :  { %1748 = vmatprep.subr.bf16.mxu0 %v2153_v5  ;;  %v362_v13 = vsel %vm360_vm1, %v2173_v9, 0  ;;  %1755 = vmatpush3.bf16.msra.mxu1 %v1919_v10  ;;  %v1925_v16 = vld [vmem:[%s2572_s4 + $0x20] sm:$0xff]   ;;  %v1931_v23 = vld [vmem:[%s2572_s4 + $0x10] sm:$0xff]  }
  0x14   :  { %1756 = vmatprep.subr.bf16.mxu1 %v1920_v11 }
  0x16   :  { %1749 = vmatpush3.bf16.msra.mxu0 %v2153_v5 }
  0x17   :  { %1910 = vmatprep.subr.msk.bf16.mxu0 %vm360_vm1, %v2173_v9  ;;  %1757 = vmatpush3.bf16.msra.mxu1 %v1920_v11 }
  0x18   :  { %1758 = vmatprep.subr.bf16.mxu1 %v1922_v15 }
  0x19   :  { %1751 = vmatmul.mubr.msk.bf16.vlgmr.msra.gmra.mxu0 %vm181_vm0, %v2171_v8 }
  0x1a   :  { %1775 = vmatpush3.bf16.msra.mxu0 %v362_v13  ;;  %1776 = vmatprep.mubr.msk.bf16.mxu0 %vm353_vm2, %v2185_v12 }
  0x1b   :  { %1635 = vmatprep.subr.bf16.mxu0 %v1921_v14  ;;  %1759 = vmatpush3.bf16.msra.mxu1 %v1922_v15 }
  0x1c   :  { %1760 = vmatprep.subr.bf16.mxu1 %v1925_v16 }
  0x1f   :  { %1761 = vmatpush3.bf16.msra.mxu1 %v1925_v16 }
  0x20   :  { %1762 = vmatprep.subr.bf16.mxu1 %v1928_v21 }
  0x21   :  { %1777 = vmatmul.mubr.msk.bf16.vlgmr.msra.gmra.mxu0 %vm353_vm2, %v2207_v17 }
  0x22   :  { %1636 = vmatpush3.bf16.msra.mxu0 %v1923_v18  ;;  %549 = vmatprep.mubr.bf16.mxu0 %v2153_v5 }
  0x23   :  { %1637 = vmatprep.subr.bf16.mxu0 %v1924_v19  ;;  %1763 = vmatpush3.bf16.msra.mxu1 %v1928_v21 }
  0x24   :  { %1764 = vmatprep.subr.bf16.mxu1 %v1931_v23 }
  0x26   :  { %1638 = vmatpush3.bf16.msra.mxu0 %v1926_v20 }
  0x27   :  { %1639 = vmatprep.subr.bf16.mxu0 %v1927_v22  ;;  %1765 = vmatpush3.bf16.msra.mxu1 %v1931_v23 }
  0x2a   :  { %1640 = vmatpush3.bf16.msra.mxu0 %v1929_v24 }
  0x2b   :  { %1641 = vmatprep.subr.bf16.mxu0 %v1930_v25 }
  0x2e   :  { %1642 = vmatpush3.bf16.msra.mxu0 %v1932_v26 }
  0x2f   :  { %28 = vsyncpa [#allocation3], 0  ;;  %v1933_v27 = vld [vmem:[%s2544_s9 + $0x18] sm:$0xff]   ;;  %v1934_v28 = vld [vmem:[%s2572_s4 + $0x8] sm:$0xff]   ;;  %v2021_v35 = vmov 0.0   ;;  %vm2022_vm3 = vmmov 0  }
  0x30   :  { %v1935_v29 = vld [vmem:[%s2542_s7 + $0x18] sm:$0xff]   ;;  %1643 = vmatprep.subr.bf16.mxu0 %v1933_v27  ;;  %1766 = vmatprep.subr.bf16.mxu1 %v1934_v28  ;;  %v1936_v30 = vld [vmem:[%s2544_s9 + $0x10] sm:$0xff]   ;;  %v1937_v31 = vld [vmem:[%s2572_s4] sm:$0xff]   ;;  %s2574_s3 = sld [smem:[#allocation8_spill]]  ;;  %s2023_s28 = smov [#allocation2]  }
  0x31   :  { %1767 = vmatpush3.bf16.msra.mxu1 %v1934_v28  ;;  %v1938_v32 = vld [vmem:[%s2542_s7 + $0x10] sm:$0xff]   ;;  %v1939_v33 = vld [vmem:[%s2544_s9 + $0x8] sm:$0xff]   ;;  %v1941_v36 = vld [vmem:[%s2544_s9] sm:$0xff]   ;;  %s2575_s9 = sld [smem:[#allocation11_spill]]  ;;  %s1508_s29 = sshll.u32 %s2023_s28, 4  ;;  %s1509_s29 = int_to_ptr.vmem [resolvable:$true] %s1508_s29 }
  0x32   :  { %1644 = vmatpush3.bf16.msra.mxu0 %v1935_v29  ;;  %1768 = vmatprep.subr.bf16.mxu1 %v1937_v31  ;;  %v1940_v34 = vld [vmem:[%s2542_s7 + $0x8] sm:$0xff]   ;;  %v1942_v37 = vld [vmem:[%s2542_s7] sm:$0xff]   ;;  %v1943_v47 = vld [vmem:[%s2547_s12 + $0x38] sm:$0xff]   ;;  %s1999_s30 = scalar_lea.vmem %s1509_s29, 128  ;;  %p2004_p1 = scmp.lt.s32.totalorder %s1509_s29, %s1509_s29 }
  0x33   :  { %1645 = vmatprep.subr.bf16.mxu0 %v1936_v30  ;;  %v1944_v51 = vld [vmem:[%s2545_s10 + $0x38] sm:$0xff]   ;;  %v1945_v52 = vld [vmem:[%s2547_s12 + $0x30] sm:$0xff]   ;;  %v1947_v54 = vld [vmem:[%s2547_s12 + $0x28] sm:$0xff]   ;;  %p2000_p0 = scmp.ne.s32.totalorder %s1509_s29, %s1999_s30  ;;  %p2005_p2 = scmp.lt.s32.totalorder %s1999_s30, %s1999_s30 }
  0x34   :  { %v1946_v53 = vld [vmem:[%s2545_s10 + $0x30] sm:$0xff]   ;;  %v1948_v56 = vld [vmem:[%s2545_s10 + $0x28] sm:$0xff]   ;;  %v1949_v57 = vld [vmem:[%s2547_s12 + $0x20] sm:$0xff]  }
  0x35   :  { %1769 = vmatpush3.bf16.msra.mxu1 %v1937_v31  ;;  %v1950_v58 = vld [vmem:[%s2545_s10 + $0x20] sm:$0xff]   ;;  %v1951_v59 = vld [vmem:[%s2547_s12 + $0x18] sm:$0xff]   ;;  %v1953_v61 = vld [vmem:[%s2547_s12 + $0x10] sm:$0xff]   ;;  %p2006_p3 = por %p2005_p2, %p2004_p1 }
  0x36   :  { %1646 = vmatpush3.bf16.msra.mxu0 %v1938_v32  ;;  %1780 = vmatprep.subr.bf16.mxu1 %v2021_v35  ;;  %v2281_v50 = vld [vmem:[%s2574_s3] sm:$0xf]  ;;  %v1952_v60 = vld [vmem:[%s2545_s10 + $0x18] sm:$0xff]   ;;  %v1954_v62 = vld [vmem:[%s2545_s10 + $0x10] sm:$0xff]  }
  0x37   :  { %1647 = vmatprep.subr.bf16.mxu0 %v1939_v33  ;;  %v1955_v63 = vld [vmem:[%s2548_s13 + $0x38] sm:$0xff]   ;;  %v1956_v0 = vld [vmem:[%s2547_s12 + $0x8] sm:$0xff]   ;;  %v1958_v2 = vld [vmem:[%s2548_s13 + $0x30] sm:$0xff]   ;;  %p2007_p4 = pnand %p2006_p3, %p2000_p0 }
  0x38   :  { %v1957_v1 = vld [vmem:[%s2545_s10 + $0x8] sm:$0xff]   ;;  %v1960_v4 = vld [vmem:[%s2545_s10] sm:$0xff]   ;;  %v1964_v10 = vld [vmem:[%s2548_s13 + $0x10] sm:$0xff]  }
  0x39   :  { %v1962_v7 = vld [vmem:[%s2548_s13 + $0x20] sm:$0xff]   ;;  %v1965_v11 = vld [vmem:[%s2548_s13 + $0x8] sm:$0xff]  }
  0x3a   :  { %1648 = vmatpush3.bf16.msra.mxu0 %v1940_v34  ;;  %v1966_v13 = vld [vmem:[%s2548_s13] sm:$0xff]  }
  0x3b   :  { %1649 = vmatprep.subr.bf16.mxu0 %v1941_v36  ;;  %v1551_v22 = vld [vmem:[%s2543_s8] ss:$0 sm:$0xff] }
  0x3c   :  { %v1522_v26 = vld [vmem:[%s2575_s9] ss:$0 sm:$0xff] }
  0x3e   :  { %1650 = vmatpush3.bf16.msra.mxu0 %v1942_v37 }
  0x3f   :  { %1788 = vmatprep.subr.bf16.mxu0 %v1955_v63 }
  0xd9   :  { %v1752_v38 = vpop.f32.mrf.mxu0 }
  0xdb   :  { %v222_v39 = vpop.f32.mrf.mxu0 }
  0xdd   :  { %v1753_v40 = vpop.f32.mrf.mxu0 }
  0xde   :  { %v238_v43 = vpack.c.bf16 %v1753_v40, %v1752_v38 }
  0xdf   :  { %v225_v41 = vpop.f32.mrf.mxu0 }
  0xe0   :  { %v237_v42 = vpack.c.bf16 %v225_v41, %v222_v39 }
  0xe1   :  { %v1778_v44 = vpop.f32.mrf.mxu0 }
  0xe2   :  { %1770 = vmatprep.mubr.bf16.mxu1 %v237_v42 }
  0xe3   :  { %1771 = vmatmul.mubr.bf16.vlgmr.msra.gmra.mxu1 %v238_v43  ;;  %v398_v45 = vpop.f32.mrf.mxu0 }
  0xe4   :  { %1781 = vmatpush3.bf16.msra.mxu1 %v2148_v3  ;;  %1784 = vmatprep.mubr.msk.bf16.mxu1 %vm2022_vm3, %v2021_v35 }
  0xe5   :  { %v1779_v46 = vpop.f32.mrf.mxu0  ;;  %1782 = vmatprep.subr.bf16.mxu1 %v2021_v35 }
  0xe6   :  { %v414_v55 = vpack.c.bf16 %v1779_v46, %v1778_v44 }
  0xe7   :  { %v401_v48 = vpop.f32.mrf.mxu0 }
  0xe8   :  { %v413_v49 = vpack.c.bf16 %v401_v48, %v398_v45  ;;  %1783 = vmatpush3.bf16.msra.mxu1 %v2153_v5  ;;  %v1961_v5 = vld [vmem:[%s2548_s13 + $0x28] sm:$0xff]  }
  0xe9   :  { %1666 = vmatprep.subr.bf16.mxu1 %v1943_v47 }
  0xea   :  { %550 = vmatmul.mubr.bf16.vlgmr.msra.gmra.mxu0 %v413_v49 }
  0xeb   :  { %1785 = vmatmul.mubr.msk.bf16.vlgmr.msra.gmra.mxu1 %vm181_vm0, %v2281_v50  ;;  %557 = vmatprep.mubr.bf16.mxu0 %v2148_v3  ;;  %v1959_v3 = vld [vmem:[%s2547_s12] sm:$0xff]  }
  0xec   :  { %1667 = vmatpush3.bf16.msra.mxu1 %v1944_v51  ;;  %744 = vmatprep.mubr.bf16.mxu1 %v2173_v9  ;;  %v1963_v9 = vld [vmem:[%s2548_s13 + $0x18] sm:$0xff]  }
  0xed   :  { %1668 = vmatprep.subr.bf16.mxu1 %v1945_v52  ;;  %1789 = vmatpush3.bf16.msra.mxu0 %v1955_v63  ;;  %v1969_v63 = vld [vmem:[%s2550_s15 + $0x28] sm:$0xff]  }
  0xee   :  { %1790 = vmatprep.subr.bf16.mxu0 %v1958_v2 }
  0xf0   :  { %1669 = vmatpush3.bf16.msra.mxu1 %v1946_v53 }
  0xf1   :  { %1670 = vmatprep.subr.bf16.mxu1 %v1947_v54  ;;  %1791 = vmatpush3.bf16.msra.mxu0 %v1958_v2  ;;  %v1972_v2 = vld [vmem:[%s2550_s15 + $0x10] sm:$0xff]  }
  0xf2   :  { %558 = vmatmul.mubr.bf16.gmra.mxu0 %v414_v55  ;;  %1792 = vmatprep.subr.bf16.mxu0 %v1961_v5 }
  0xf4   :  { %1671 = vmatpush3.bf16.msra.mxu1 %v1948_v56 }
  0xf5   :  { %1672 = vmatprep.subr.bf16.mxu1 %v1949_v57  ;;  %1793 = vmatpush3.bf16.msra.mxu0 %v1961_v5 }
  0xf6   :  { %1794 = vmatprep.subr.bf16.mxu0 %v1962_v7 }
  0xf8   :  { %1673 = vmatpush3.bf16.msra.mxu1 %v1950_v58 }
  0xf9   :  { %1674 = vmatprep.subr.bf16.mxu1 %v1951_v59  ;;  %1795 = vmatpush3.bf16.msra.mxu0 %v1962_v7  ;;  %v1569_v7 = vld [vmem:[%s2546_s11] ss:$0 sm:$0xff] }
  0xfa   :  { %1796 = vmatprep.subr.bf16.mxu0 %v1963_v9 }
  0xfc   :  { %1675 = vmatpush3.bf16.msra.mxu1 %v1952_v60  ;;  %v1967_v60 = vld [vmem:[%s2550_s15 + $0x38] sm:$0xff]  }
  0xfd   :  { %1676 = vmatprep.subr.bf16.mxu1 %v1953_v61  ;;  %1797 = vmatpush3.bf16.msra.mxu0 %v1963_v9 }
  0xfe   :  { %1798 = vmatprep.subr.bf16.mxu0 %v1964_v10 }
 0x100   :  { %1677 = vmatpush3.bf16.msra.mxu1 %v1954_v62  ;;  %v1968_v62 = vld [vmem:[%s2550_s15 + $0x30] sm:$0xff]  }
 0x101   :  { %1678 = vmatprep.subr.bf16.mxu1 %v1956_v0  ;;  %1799 = vmatpush3.bf16.msra.mxu0 %v1964_v10  ;;  %v1970_v0 = vld [vmem:[%s2550_s15 + $0x20] sm:$0xff]  }
 0x102   :  { %1800 = vmatprep.subr.bf16.mxu0 %v1965_v11 }
 0x104   :  { %1679 = vmatpush3.bf16.msra.mxu1 %v1957_v1  ;;  %v1971_v1 = vld [vmem:[%s2550_s15 + $0x18] sm:$0xff]  }
 0x105   :  { %1680 = vmatprep.subr.bf16.mxu1 %v1959_v3  ;;  %1801 = vmatpush3.bf16.msra.mxu0 %v1965_v11  ;;  %v1973_v3 = vld [vmem:[%s2550_s15 + $0x8] sm:$0xff]  }
 0x106   :  { %1802 = vmatprep.subr.bf16.mxu0 %v1966_v13 }
 0x108   :  { %1681 = vmatpush3.bf16.msra.mxu1 %v1960_v4  ;;  %v1974_v4 = vld [vmem:[%s2550_s15] sm:$0xff]  }
 0x109   :  { %1803 = vmatpush3.bf16.msra.mxu0 %v1966_v13 }
 0x10a   :  { %1816 = vmatprep.subr.bf16.mxu0 %v2021_v35 }
 0x1a3   :  { %v1772_v14 = vpop.f32.mrf.mxu1 }
 0x1a4   :  { %v336_v44 = vadd.f32 %v1772_v14, %v1522_v26 }
 0x1a5   :  { %v327_v15 = vpop.f32.mrf.mxu1 }
 0x1a6   :  { %v328_v28 = vadd.f32 %v1522_v26, %v327_v15 }
 0x1a7   :  { %v1773_v16 = vpop.f32.mrf.mxu1 }
 0x1a8   :  { %v339_v52 = vadd.f32 %v1773_v16, %v1522_v26 }
 0x1a9   :  { %v330_v18 = vpop.f32.mrf.mxu1 }
 0x1aa   :  { %v1651_v19 = vpop.f32.mrf.mxu0  ;;  %v331_v37 = vadd.f32 %v1522_v26, %v330_v18  ;;  %v1978_v26 = vld [vmem:[%s2552_s17 + $0x20] sm:$0xff]  }
 0x1ab   :  { %v603_v20 = vpop.f32.mrf.mxu1 }
 0x1ac   :  { %v609_v21 = vpack.c.bf16 %v603_v20, %v603_v20  ;;  %v1652_v23 = vpop.f32.mrf.mxu0 }
 0x1ad   :  { %v1653_v24 = vadd.f32 %v1652_v23, %v1651_v19  ;;  %v1786_v25 = vpop.f32.mrf.mxu1 }
 0x1ae   :  { %v1654_v27 = vpop.f32.mrf.mxu0  ;;  %745 = vmatmul.mubr.bf16.vlgmr.msra.gmra.mxu1 %v609_v21  ;;  %v1976_v25 = vld [vmem:[%s2552_s17 + $0x30] sm:$0xff]  }
 0x1af   :  { %v552_v29 = vadd.f32 %v1653_v24, %v1551_v22  ;;  %v606_v30 = vpop.f32.mrf.mxu1  ;;  %1812 = vmatprep.mubr.msk.bf16.mxu1 %vm181_vm0, %v2158_v6  ;;  %v1975_v24 = vld [vmem:[%s2552_s17 + $0x38] sm:$0xff]  }
 0x1b0   :  { %v1655_v31 = vpop.f32.mrf.mxu0  ;;  %v1983_v30 = vld [vmem:[%s2553_s18 + $0x38] sm:$0xff]  }
 0x1b1   :  { %v752_v32 = vadd.f32 %v552_v29, %v328_v28  ;;  %v1656_v33 = vadd.f32 %v1655_v31, %v1654_v27  ;;  %v1787_v34 = vpop.f32.mrf.mxu1  ;;  %v1980_v27 = vld [vmem:[%s2552_s17 + $0x10] sm:$0xff]   ;;  %v1981_v28 = vld [vmem:[%s2552_s17 + $0x8] sm:$0xff]   ;;  %v1982_v29 = vld [vmem:[%s2552_s17] sm:$0xff]  }
 0x1b2   :  { %v1657_v36 = vpop.f32.mrf.mxu0  ;;  %v1984_v31 = vld [vmem:[%s2553_s18 + $0x30] sm:$0xff]   ;;  %v1987_v34 = vld [vmem:[%s2553_s18 + $0x18] sm:$0xff]  }
 0x1b3   :  { %v555_v38 = vadd.f32 %v1656_v33, %v1551_v22  ;;  %v756_v40 = vmul.f32 0.5, %v752_v32  ;;  %v1985_v32 = vld [vmem:[%s2553_s18 + $0x28] sm:$0xff]   ;;  %v1986_v33 = vld [vmem:[%s2553_s18 + $0x20] sm:$0xff]  }
 0x1b4   :  { %v1658_v39 = vpop.f32.mrf.mxu0 }
 0x1b5   :  { %v753_v41 = vadd.f32 %v555_v38, %v331_v37  ;;  %v1659_v42 = vadd.f32 %v1658_v39, %v1657_v36  ;;  %v760_v48 = vmax.f32 %v756_v40, 0.0  ;;  %v1988_v36 = vld [vmem:[%s2553_s18 + $0x10] sm:$0xff]   ;;  %v1989_v37 = vld [vmem:[%s2553_s18 + $0x8] sm:$0xff]   ;;  %v1990_v38 = vld [vmem:[%s2553_s18] sm:$0xff]  }
 0x1b6   :  { %v1660_v43 = vpop.f32.mrf.mxu0 }
 0x1b7   :  { %v757_v45 = vmul.f32 0.5, %v753_v41  ;;  %v560_v46 = vadd.f32 %v1659_v42, %v1551_v22 }
 0x1b8   :  { %v1661_v47 = vpop.f32.mrf.mxu0 }
 0x1b9   :  { %v761_v49 = vmax.f32 %v757_v45, 0.0  ;;  %v754_v51 = vadd.f32 %v560_v46, %v336_v44  ;;  %v1662_v6 = vadd.f32 %v1661_v47, %v1660_v43  ;;  %v1991_v43 = vld [vmem:[%s2555_s20 + $0x38] sm:$0xff]   ;;  %v1992_v46 = vld [vmem:[%s2555_s20 + $0x30] sm:$0xff]   ;;  %v1993_v47 = vld [vmem:[%s2555_s20 + $0x28] sm:$0xff]  }
 0x1bb   :  { %v563_v53 = vadd.f32 %v1662_v6, %v1551_v22  ;;  %v2365_v54 = vpack.c.bf16 %v761_v49, %v760_v48  ;;  %v758_v55 = vmul.f32 0.5, %v754_v51  ;;  %v1995_v48 = vld [vmem:[%s2555_s20 + $0x18] sm:$0xff]   ;;  %v1996_v49 = vld [vmem:[%s2555_s20 + $0x10] sm:$0xff]   ;;  %v1997_v51 = vld [vmem:[%s2555_s20 + $0x8] sm:$0xff]  }
 0x1bc   :  { %v1998_v6 = vld [vmem:[%s2555_s20] sm:$0xff]  }
 0x1bd   :  { %v755_v56 = vadd.f32 %v563_v53, %v339_v52  ;;  %1804 = vmatprep.mubr.bf16.mxu0 %v2365_v54  ;;  %v762_v58 = vmax.f32 %v758_v55, 0.0 }
 0x1bf   :  { %v759_v57 = vmul.f32 0.5, %v755_v56 }
 0x1c1   :  { %v763_v59 = vmax.f32 %v759_v57, 0.0 }
 0x1c3   :  { %v2371_v61 = vpack.c.bf16 %v763_v59, %v762_v58 }
 0x1c5   :  { %1805 = vmatmul.mubr.bf16.vlgmr.msra.gmra.mxu0 %v2371_v61 }
 0x1c6   :  { %1817 = vmatpush3.bf16.msra.mxu0 %v1967_v60  ;;  %1832 = vmatprep.mubr.msk.bf16.mxu0 %vm2022_vm3, %v2021_v35 }
 0x1c7   :  { %1818 = vmatprep.subr.bf16.mxu0 %v2021_v35 }
 0x1ca   :  { %1819 = vmatpush3.bf16.msra.mxu0 %v1968_v62 }
 0x1cb   :  { %1820 = vmatprep.subr.bf16.mxu0 %v2021_v35 }
 0x1ce   :  { %1821 = vmatpush3.bf16.msra.mxu0 %v1969_v63 }
 0x1cf   :  { %1822 = vmatprep.subr.bf16.mxu0 %v2021_v35 }
 0x1d2   :  { %1823 = vmatpush3.bf16.msra.mxu0 %v1970_v0 }
 0x1d3   :  { %1824 = vmatprep.subr.bf16.mxu0 %v2021_v35 }
 0x1d6   :  { %1825 = vmatpush3.bf16.msra.mxu0 %v1971_v1 }
 0x1d7   :  { %1826 = vmatprep.subr.bf16.mxu0 %v2021_v35 }
 0x1da   :  { %1827 = vmatpush3.bf16.msra.mxu0 %v1972_v2  ;;  %v1578_v2 = vld [vmem:[%s2549_s14] ss:$0 sm:$0xff] }
 0x1db   :  { %1828 = vmatprep.subr.bf16.mxu0 %v2021_v35 }
 0x1de   :  { %1829 = vmatpush3.bf16.msra.mxu0 %v1973_v3  ;;  %v1599_v3 = vld [vmem:[%s2551_s16] ss:$0 sm:$0xff] }
 0x1df   :  { %1830 = vmatprep.subr.bf16.mxu0 %v2021_v35 }
 0x1e2   :  { %1831 = vmatpush3.bf16.msra.mxu0 %v1974_v4 }
 0x26e   :  { %v1682_v5 = vpop.f32.mrf.mxu1 }
 0x270   :  { %v1683_v9 = vpop.f32.mrf.mxu1 }
 0x271   :  { %v1684_v10 = vadd.f32 %v1683_v9, %v1682_v5 }
 0x272   :  { %v1685_v11 = vpop.f32.mrf.mxu1 }
 0x273   :  { %v747_v13 = vadd.f32 %v1684_v10, %v1569_v7 }
 0x274   :  { %v1686_v14 = vpop.f32.mrf.mxu1 }
 0x275   :  { %v764_v15 = vmax.f32 %v747_v13, 0.0 }
 0x277   :  { %v2407_v16 = vpack.c.bf16 %v764_v15, %v764_v15 }
 0x279   :  { %1833 = vmatmul.mubr.bf16.vlgmr.msra.gmra.mxu0 %v2407_v16 }
 0x27a   :  { %1858 = vmatprep.mubr.msk.bf16.mxu0 %vm353_vm2, %v2185_v12  ;;  %v1977_v12 = vld [vmem:[%s2552_s17 + $0x28] sm:$0xff]  }
 0x285   :  { %v1806_v18 = vpop.f32.mrf.mxu0 }
 0x287   :  { %v932_v19 = vpop.f32.mrf.mxu0 }
 0x289   :  { %v1807_v20 = vpop.f32.mrf.mxu0 }
 0x28a   :  { %v948_v21 = vpack.c.bf16 %v1807_v20, %v1806_v18 }
 0x28b   :  { %v935_v22 = vpop.f32.mrf.mxu0 }
 0x28c   :  { %v947_v23 = vpack.c.bf16 %v935_v22, %v932_v19  ;;  %1808 = vmatprep.subr.bf16.mxu1 %v948_v21 }
 0x28d   :  { %1809 = vmatpush3.bf16.msra.mxu1 %v948_v21 }
 0x28e   :  { %1810 = vmatprep.subr.bf16.mxu1 %v947_v23 }
 0x291   :  { %1811 = vmatpush3.bf16.msra.mxu1 %v947_v23 }
 0x292   :  { %1836 = vmatprep.subr.bf16.mxu1 %v1975_v24 }
 0x294   :  { %1813 = vmatmul.mubr.msk.bf16.vlgmr.msra.gmra.mxu1 %vm181_vm0, %v2171_v8  ;;  %v1979_v8 = vld [vmem:[%s2552_s17 + $0x18] sm:$0xff]  }
 0x295   :  { %1837 = vmatpush3.bf16.msra.mxu1 %v1975_v24  ;;  %1852 = vmatprep.mubr.bf16.mxu1 %v2365_v54 }
 0x296   :  { %1838 = vmatprep.subr.bf16.mxu1 %v1976_v25 }
 0x299   :  { %1839 = vmatpush3.bf16.msra.mxu1 %v1976_v25 }
 0x29a   :  { %1840 = vmatprep.subr.bf16.mxu1 %v1977_v12 }
 0x29d   :  { %1841 = vmatpush3.bf16.msra.mxu1 %v1977_v12 }
 0x29e   :  { %1842 = vmatprep.subr.bf16.mxu1 %v1978_v26 }
 0x2a1   :  { %1843 = vmatpush3.bf16.msra.mxu1 %v1978_v26 }
 0x2a2   :  { %1844 = vmatprep.subr.bf16.mxu1 %v1979_v8 }
 0x2a5   :  { %1845 = vmatpush3.bf16.msra.mxu1 %v1979_v8 }
 0x2a6   :  { %1846 = vmatprep.subr.bf16.mxu1 %v1980_v27 }
 0x2a9   :  { %1847 = vmatpush3.bf16.msra.mxu1 %v1980_v27 }
 0x2aa   :  { %1848 = vmatprep.subr.bf16.mxu1 %v1981_v28 }
 0x2ad   :  { %1849 = vmatpush3.bf16.msra.mxu1 %v1981_v28 }
 0x2ae   :  { %1850 = vmatprep.subr.bf16.mxu1 %v1982_v29 }
 0x2b1   :  { %1851 = vmatpush3.bf16.msra.mxu1 %v1982_v29 }
 0x2b2   :  { %1862 = vmatprep.subr.bf16.mxu1 %v1983_v30 }
 0x2b4   :  { %1853 = vmatmul.mubr.bf16.vlgmr.msra.gmra.mxu1 %v2371_v61 }
 0x2b5   :  { %1863 = vmatpush3.bf16.msra.mxu1 %v1983_v30  ;;  %1878 = vmatprep.mubr.bf16.mxu1 %v2365_v54 }
 0x2b6   :  { %1864 = vmatprep.subr.bf16.mxu1 %v1984_v31 }
 0x2b9   :  { %1865 = vmatpush3.bf16.msra.mxu1 %v1984_v31 }
 0x2ba   :  { %1866 = vmatprep.subr.bf16.mxu1 %v1985_v32 }
 0x2bd   :  { %1867 = vmatpush3.bf16.msra.mxu1 %v1985_v32 }
 0x2be   :  { %1868 = vmatprep.subr.bf16.mxu1 %v1986_v33 }
 0x2c1   :  { %1869 = vmatpush3.bf16.msra.mxu1 %v1986_v33  ;;  %v1617_v33 = vld [vmem:[%s2554_s19] ss:$0 sm:$0xff] }
 0x2c2   :  { %1870 = vmatprep.subr.bf16.mxu1 %v1987_v34 }
 0x2c5   :  { %1871 = vmatpush3.bf16.msra.mxu1 %v1987_v34 }
 0x2c6   :  { %1872 = vmatprep.subr.bf16.mxu1 %v1988_v36 }
 0x2c9   :  { %1873 = vmatpush3.bf16.msra.mxu1 %v1988_v36 }
 0x2ca   :  { %1874 = vmatprep.subr.bf16.mxu1 %v1989_v37 }
 0x2cd   :  { %1875 = vmatpush3.bf16.msra.mxu1 %v1989_v37 }
 0x2ce   :  { %1876 = vmatprep.subr.bf16.mxu1 %v1990_v38 }
 0x2d1   :  { %1877 = vmatpush3.bf16.msra.mxu1 %v1990_v38 }
 0x2d2   :  { %1902 = vmatprep.subr.bf16.mxu1 %v2021_v35 }
 0x2d4   :  { %1879 = vmatmul.mubr.bf16.vlgmr.msra.gmra.mxu1 %v2371_v61 }
 0x2d5   :  { %1906 = vmatprep.mubr.msk.bf16.mxu1 %vm2022_vm3, %v2021_v35 }
 0x339   :  { %v1087_v39 = vpop.f32.mrf.mxu0 }
 0x33a   :  { %v1093_v40 = vpack.c.bf16 %v1087_v39, %v1087_v39 }
 0x33b   :  { %v1834_v41 = vpop.f32.mrf.mxu0 }
 0x33c   :  { %v1192_v42 = vsel %vm360_vm1, %v1093_v40, 0  ;;  %1911 = vmatprep.subr.msk.bf16.mxu0 %vm360_vm1, %v1093_v40 }
 0x33d   :  { %1857 = vmatpush3.bf16.msra.mxu0 %v1192_v42  ;;  %v1090_v44 = vpop.f32.mrf.mxu0 }
 0x33e   :  { %1882 = vmatprep.subr.bf16.mxu0 %v2021_v35 }
 0x33f   :  { %v1835_v45 = vpop.f32.mrf.mxu0 }
 0x340   :  { %1859 = vmatmul.mubr.msk.bf16.vlgmr.msra.gmra.mxu0 %vm353_vm2, %v2207_v17  ;;  %v1994_v17 = vld [vmem:[%s2555_s20 + $0x20] sm:$0xff]  }
 0x341   :  { %1883 = vmatpush3.bf16.msra.mxu0 %v1991_v43  ;;  %1898 = vmatprep.mubr.msk.bf16.mxu0 %vm2022_vm3, %v2021_v35 }
 0x342   :  { %1884 = vmatprep.subr.bf16.mxu0 %v2021_v35 }
 0x345   :  { %1885 = vmatpush3.bf16.msra.mxu0 %v1992_v46 }
 0x346   :  { %1886 = vmatprep.subr.bf16.mxu0 %v2021_v35 }
 0x349   :  { %1887 = vmatpush3.bf16.msra.mxu0 %v1993_v47 }
 0x34a   :  { %1888 = vmatprep.subr.bf16.mxu0 %v2021_v35 }
 0x34d   :  { %1889 = vmatpush3.bf16.msra.mxu0 %v1994_v17 }
 0x34e   :  { %1890 = vmatprep.subr.bf16.mxu0 %v2021_v35 }
 0x351   :  { %1891 = vmatpush3.bf16.msra.mxu0 %v1995_v48 }
 0x352   :  { %1892 = vmatprep.subr.bf16.mxu0 %v2021_v35 }
 0x354   :  { %v1814_v52 = vpop.f32.mrf.mxu1 }
 0x355   :  { %1893 = vmatpush3.bf16.msra.mxu0 %v1996_v49  ;;  %v998_v9 = vadd.f32 %v1814_v52, %v1578_v2 }
 0x356   :  { %1894 = vmatprep.subr.bf16.mxu0 %v2021_v35  ;;  %v989_v53 = vpop.f32.mrf.mxu1 }
 0x357   :  { %v990_v13 = vadd.f32 %v1578_v2, %v989_v53 }
 0x358   :  { %v1815_v54 = vpop.f32.mrf.mxu1 }
 0x359   :  { %1895 = vmatpush3.bf16.msra.mxu0 %v1997_v51 }
 0x35a   :  { %1896 = vmatprep.subr.bf16.mxu0 %v2021_v35  ;;  %v992_v55 = vpop.f32.mrf.mxu1 }
 0x35b   :  { %v993_v23 = vadd.f32 %v1578_v2, %v992_v55 }
 0x35d   :  { %1897 = vmatpush3.bf16.msra.mxu0 %v1998_v6 }
 0x360   :  { %1899 = vmatmul.mubr.bf16.vlgmr.msra.gmra.mxu0 %v2407_v16 }
 0x374   :  { %v1854_v56 = vpop.f32.mrf.mxu1 }
 0x376   :  { %v1176_v57 = vpop.f32.mrf.mxu1 }
 0x378   :  { %v1855_v58 = vpop.f32.mrf.mxu1 }
 0x37a   :  { %v1179_v59 = vpop.f32.mrf.mxu1 }
 0x394   :  { %v1880_v60 = vpop.f32.mrf.mxu1 }
 0x396   :  { %v1335_v61 = vpop.f32.mrf.mxu1 }
 0x398   :  { %v1881_v62 = vpop.f32.mrf.mxu1 }
 0x399   :  { %v1351_v63 = vpack.c.bf16 %v1881_v62, %v1880_v60 }
 0x39a   :  { %v1338_v0 = vpop.f32.mrf.mxu1 }
 0x39b   :  { %1903 = vmatpush3.bf16.msra.mxu1 %v1351_v63  ;;  %v1350_v1 = vpack.c.bf16 %v1338_v0, %v1335_v61 }
 0x39c   :  { %1904 = vmatprep.subr.bf16.mxu1 %v2021_v35 }
 0x39f   :  { %1905 = vmatpush3.bf16.msra.mxu1 %v1350_v1 }
 0x3a2   :  { %1907 = vmatmul.mubr.msk.bf16.vlgmr.msra.gmra.mxu1 %vm181_vm0, %v2281_v50  ;;  %v1001_v50 = vadd.f32 %v1815_v54, %v1578_v2 }
 0x400   :  { %v1860_v4 = vpop.f32.mrf.mxu0 }
 0x401   :  { %v1237_v5 = vadd.f32 %v1860_v4, %v1854_v56 }
 0x402   :  { %v1228_v7 = vpop.f32.mrf.mxu0 }
 0x403   :  { %v1251_v10 = vadd.f32 %v1599_v3, %v1237_v5  ;;  %v1229_v11 = vadd.f32 %v1228_v7, %v1176_v57 }
 0x404   :  { %v1861_v35 = vpop.f32.mrf.mxu0 }
 0x405   :  { %v1489_v14 = vadd.f32 %v1251_v10, %v998_v9  ;;  %v1249_v15 = vadd.f32 %v1599_v3, %v1229_v11  ;;  %v1240_v16 = vadd.f32 %v1861_v35, %v1855_v58 }
 0x406   :  { %v1231_v18 = vpop.f32.mrf.mxu0 }
 0x407   :  { %v1493_v19 = vmul.f32 0.5, %v1489_v14  ;;  %v1487_v20 = vadd.f32 %v1249_v15, %v990_v13  ;;  %v1252_v21 = vadd.f32 %v1599_v3, %v1240_v16  ;;  %v1232_v22 = vadd.f32 %v1231_v18, %v1179_v59 }
 0x409   :  { %1497 = vst [vmem:[%s2556_s21 + $0x10] sm:$0xff] %v1493_v19  ;;  %v1491_v24 = vmul.f32 0.5, %v1487_v20  ;;  %v1490_v25 = vadd.f32 %v1252_v21, %v1001_v50  ;;  %v1250_v12 = vadd.f32 %v1599_v3, %v1232_v22 }
 0x40b   :  { %1495 = vst [vmem:[%s2556_s21] sm:$0xff] %v1491_v24  ;;  %v1494_v26 = vmul.f32 0.5, %v1490_v25  ;;  %v1488_v8 = vadd.f32 %v1250_v12, %v993_v23 }
 0x40d   :  { %1498 = vst [vmem:[%s2556_s21 + $0x18] sm:$0xff] %v1494_v26  ;;  %v1492_v27 = vmul.f32 0.5, %v1488_v8 }
 0x40f   :  { %1496 = vst [vmem:[%s2556_s21 + $0x8] sm:$0xff] %v1492_v27 }
 0x420   :  { %v1434_v28 = vpop.f32.mrf.mxu0 }
 0x422   :  { %v1900_v29 = vpop.f32.mrf.mxu0 }
 0x424   :  { %v1437_v30 = vpop.f32.mrf.mxu0 }
 0x426   :  { %v1901_v31 = vpop.f32.mrf.mxu0 }
 0x462   :  { %v1474_v32 = vpop.f32.mrf.mxu1 }
 0x463   :  { %v1475_v34 = vadd.f32 %v1474_v32, %v1434_v28 }
 0x464   :  { %v1908_v36 = vpop.f32.mrf.mxu1 }
 0x465   :  { %v1486_v37 = vadd.f32 %v1617_v33, %v1475_v34 }
 0x466   :  { %v1477_v38 = vpop.f32.mrf.mxu1 }
 0x467   :  { %1499 = vst [vmem:[#allocation2] sm:$0xff] %v1486_v37 }
 0x468   :  { %v1909_v39 = vpop.f32.mrf.mxu1 }
 0x469   :  { %2010 = shalt.err (!%p2007_p4)
}
 0x46a   :  { %1511 = dma.vmem_to_hbm [thread:$0]  %s1509_s29, 128, %s2557_s22, [#allocation3]  }
 0x46b   :  { %2019 = dma.done.wait [#allocation3], 128  }
 0x46c   :  { %2020 = vsyncadd [#allocation3], 4294967168 }
 0x46d   :  { %1517 = vsyncpa [#allocation3], 1 }

</bundles_post_ra>
